<compile_context>
chip_gen: v7x
topology: tpu7x:2x2x1
jax: 0.10.0
libtpu: 0.0.40
codegen_flags: <defaults>
</compile_context>

<pallas_src>
import jax
import jax.numpy as jnp
from jax import lax
from jax.experimental import pallas as pl
from jax.experimental.pallas import tpu as pltpu


def _round_up(a, m):
    return (a + m - 1) // m * m


def _make_kernel(pad_dims, pad_starts):
    """Build the kernel closure over the static per-field padded row layout."""
    num_fields = len(pad_dims)

    def kernel(xT_ref, iota_ref, vT_ref, b_ref, out_ref, counts_ref):
        xall = xT_ref[...]                                     # (F, TB) int32
        iota_all = iota_ref[...]                               # (max_pad, TB) int32

        # Per-field disjoint one-hot: field f owns rows
        # [pad_starts[f], pad_starts[f] + pad_dims[f]) of the counts scratch.
        # Each row is written exactly once; slice starts/lengths are static
        # multiples of 8 -> sublane-aligned stores.  All slices together cover
        # the whole scratch every grid step, so no stale data feeds the dot.
        for f in range(num_fields):
            d = pad_dims[f]
            s = pad_starts[f]
            mask = xall[f:f + 1, :] == iota_all[0:d, :]        # (d, TB) bool
            counts_ref[s:s + d, :] = mask.astype(jnp.float32)  # single cast

        # logits^T = vT @ counts + b  -> (O, TB), lane-dense output tile.
        # MXU is not the binding unit here (O small, T small) -> f32 is fine.
        logits = jnp.dot(vT_ref[...], counts_ref[...],
                         preferred_element_type=jnp.float32) + b_ref[...]

        # sigmoid(x) = 1 / (1 + exp(-x)); reciprocal on the EUP (approx) path.
        out_ref[...] = pl.reciprocal(1.0 + jnp.exp(-logits), approx=True)

    return kernel


def logistic_regression_with_embedding(x, field_dims, emb_table, lin_w, lin_b,
                                        *, block_b=2048):
    """Forward pass of LogisticRegressionWithEmbedding.

    x          : (B, F) int field-local indices, x[:, f] in [0, field_dims[f]).
    field_dims : static Python sequence of per-field cardinalities (length F);
                 this is the constructor data the PyTorch module derives its
                 `offsets` from (offsets = cumsum([0] + field_dims[:-1])).
    emb_table  : (T, E) with T = sum(field_dims).
    lin_w      : (O, E),  lin_b : (O,).
    Returns (B,) for O == 1 (matches y_pred.squeeze(1)), else (B, O).
    """
    field_dims = tuple(int(d) for d in field_dims)
    B, F = x.shape
    T, E = emb_table.shape
    O = lin_w.shape[0]
    assert F == len(field_dims) and T == sum(field_dims)

    # ---- static per-field padded row layout (multiples of 8 sublanes) ------
    pad_dims, pad_starts, offsets = [], [], []
    ps = off = 0
    for d in field_dims:
        pad_starts.append(ps)
        offsets.append(off)
        dp = _round_up(d, 8)
        pad_dims.append(dp)
        ps += dp
        off += d
    T_pad = ps
    max_pad = max(pad_dims)

    # ---- wrapper-side algebraic fold (exact, pure linearity) ---------------
    # vT[o, t] = sum_e W[o, e] * emb[t, e] / F, scattered into the padded
    # per-field row blocks (padding rows are zero -> harmless even if hit).
    vT_full = (lin_w.astype(jnp.float32) @ emb_table.astype(jnp.float32).T) * (1.0 / F)
    vT = jnp.zeros((O, T_pad), jnp.float32)
    for f in range(F):
        vT = vT.at[:, pad_starts[f]:pad_starts[f] + field_dims[f]].set(
            vT_full[:, offsets[f]:offsets[f] + field_dims[f]])

    # ---- batch tiling: 128-multiple lane-dense tiles; >=2 grid steps when
    # possible so v7x's second TensorCore gets work ---------------------------
    B_pad = _round_up(B, 128)
    n_target = 2 if B_pad > 128 else 1
    TB = min(block_b, _round_up(pl.cdiv(B_pad, n_target), 128))
    B_pad = _round_up(B_pad, TB)
    grid = (B_pad // TB,)

    xT = jnp.transpose(x.astype(jnp.int32))                    # (F, B) lane-dense batch
    if B_pad != B:
        # pad with local index 0 (valid); padded columns are sliced off below
        xT = jnp.pad(xT, ((0, 0), (0, B_pad - B)))

    # Field-local iota, hoisted out of the kernel as a tiny resident input
    # (avoids a per-step broadcasted_iota pass and is megacore-safe).
    iota = jnp.broadcast_to(
        jnp.arange(max_pad, dtype=jnp.int32)[:, None], (max_pad, TB))

    bO = lin_b.reshape(O, 1).astype(jnp.float32)

    # ---- VMEM budget sanity (everything is tiny at small T) ----------------
    vmem_limit = 32 * 1024 * 1024       # safe on v5e/v6e (128 MiB) and v7x (64 MiB)
    need = 4 * (2 * F * TB              # xT, double-buffered
                + 2 * max_pad * TB      # iota
                + O * T_pad + O         # folded table + bias (resident)
                + T_pad * TB            # counts scratch
                + 2 * O * TB)           # output, double-buffered
    assert need < vmem_limit, "tile too large for VMEM budget; lower block_b"

    out = pl.pallas_call(
        _make_kernel(tuple(pad_dims), tuple(pad_starts)),
        out_shape=jax.ShapeDtypeStruct((O, B_pad), jnp.float32),
        grid_spec=pltpu.PrefetchScalarGridSpec(
            num_scalar_prefetch=0,
            grid=grid,
            in_specs=[
                pl.BlockSpec((F, TB), lambda i: (0, i)),        # per-tile indices
                pl.BlockSpec((max_pad, TB), lambda i: (0, 0)),  # field-local iota (resident)
                pl.BlockSpec((O, T_pad), lambda i: (0, 0)),     # folded table (resident)
                pl.BlockSpec((O, 1), lambda i: (0, 0)),         # bias (resident)
            ],
            out_specs=pl.BlockSpec((O, TB), lambda i: (0, i)),
            scratch_shapes=[pltpu.VMEM((T_pad, TB), jnp.float32)],
        ),
        compiler_params=pltpu.CompilerParams(
            dimension_semantics=("parallel",),
            vmem_limit_bytes=vmem_limit,
        ),
    )(xT, iota, vT, bO)

    y = out[:, :B]                                              # drop padded batch columns
    # matches y_pred.squeeze(1): (B,) for O == 1, (B, O) otherwise
    return y[0] if O == 1 else y.T


def _reference(x, field_dims, emb_table, lin_w, lin_b):
    offs = [0]
    for d in field_dims[:-1]:
        offs.append(offs[-1] + d)
    offsets = jnp.array(offs, dtype=jnp.int32)
    idx = x + offsets[None, :]
    emb = emb_table[idx]                       # (B, F, E)
    mean_emb = emb.mean(axis=1)                # (B, E)
    logits = mean_emb @ lin_w.T + lin_b        # (B, O)
    y = jax.nn.sigmoid(logits)
    return y[:, 0] if lin_w.shape[0] == 1 else y


if __name__ == "__main__":
    key = jax.random.PRNGKey(0)

    # non-uniform field cardinalities -> exercises the padded row layout
    field_dims = (10, 3, 7, 20)
    num_fields = len(field_dims)
    total_field_dims = sum(field_dims)                          # 40
    embedding_dim = 16
    output_dim = 1

    k_emb, k_w, k_b, k_x, k_x2, k_x3, k_w3, k_b3 = jax.random.split(key, 8)

    # xavier_uniform_ for embedding weight
    bound = (6.0 / (total_field_dims + embedding_dim)) ** 0.5
    emb_table = jax.random.uniform(k_emb, (total_field_dims, embedding_dim),
                                   jnp.float32, -bound, bound)

    # PyTorch default-style uniform linear params
    lw_bound = 1.0 / (embedding_dim ** 0.5)
    lin_w = jax.random.uniform(k_w, (output_dim, embedding_dim),
                               jnp.float32, -lw_bound, lw_bound)
    lin_b = jax.random.uniform(k_b, (output_dim,),
                               jnp.float32, -lw_bound, lw_bound)

    def sample_x(k, batch):
        cols = []
        for f, d in enumerate(field_dims):
            kf = jax.random.fold_in(k, f)
            cols.append(jax.random.randint(kf, (batch, 1), 0, d, dtype=jnp.int32))
        return jnp.concatenate(cols, axis=1)

    # --- small batch (single grid step) -------------------------------------
    batch = 8
    x = sample_x(k_x, batch)
    y = jax.block_until_ready(
        logistic_regression_with_embedding(x, field_dims, emb_table, lin_w, lin_b))
    y_ref = _reference(x, field_dims, emb_table, lin_w, lin_b)
    assert y.shape == (batch,)
    assert jnp.allclose(y, y_ref, atol=5e-3, rtol=5e-3)

    # --- larger batch (multi-step grid + batch padding) ----------------------
    batch2 = 300
    x2 = sample_x(k_x2, batch2)
    y2 = jax.block_until_ready(
        logistic_regression_with_embedding(x2, field_dims, emb_table, lin_w, lin_b,
                                            block_b=128))
    y2_ref = _reference(x2, field_dims, emb_table, lin_w, lin_b)
    assert y2.shape == (batch2,)
    assert jnp.allclose(y2, y2_ref, atol=5e-3, rtol=5e-3)

    # --- output_dim > 1 path (returns (B, O)) --------------------------------
    output_dim3 = 3
    lin_w3 = jax.random.uniform(k_w3, (output_dim3, embedding_dim),
                                jnp.float32, -lw_bound, lw_bound)
    lin_b3 = jax.random.uniform(k_b3, (output_dim3,),
                                jnp.float32, -lw_bound, lw_bound)
    x3 = sample_x(k_x3, 16)
    y3 = jax.block_until_ready(
        logistic_regression_with_embedding(x3, field_dims, emb_table, lin_w3, lin_b3))
    y3_ref = _reference(x3, field_dims, emb_table, lin_w3, lin_b3)
    assert y3.shape == (16, output_dim3)
    assert jnp.allclose(y3, y3_ref, atol=5e-3, rtol=5e-3)

    print("KERNEL_OK")
</pallas_src>

<mosaic_0001>
module attributes {stable_mosaic.version = 11 : i64} {
  func.func @kernel(%arg0: i32, %arg1: memref<4x128xi32, #tpu.memory_space<vmem>>, %arg2: memref<24x128xi32, #tpu.memory_space<vmem>>, %arg3: memref<1x56xf32, #tpu.memory_space<vmem>>, %arg4: memref<1x1xf32, #tpu.memory_space<vmem>>, %arg5: memref<1x128xf32, #tpu.memory_space<vmem>>, %arg6: memref<56x128xf32, #tpu.memory_space<vmem>>) attributes {dimension_semantics = [#tpu.dimension_semantics<parallel>], iteration_bounds = array<i64: 1>, scalar_prefetch = 0 : i64, scratch_operands = 1 : i64, tpu.core_type = #tpu.core_type<tc>, window_params = [{transform_indices = @transform_0, window_bounds = array<i64: 4, 128>}, {pipeline_mode = #tpu.pipeline_mode<synchronous>, transform_indices = @transform_1, window_bounds = array<i64: 24, 128>}, {pipeline_mode = #tpu.pipeline_mode<synchronous>, transform_indices = @transform_2, window_bounds = array<i64: 1, 56>}, {pipeline_mode = #tpu.pipeline_mode<synchronous>, transform_indices = @transform_3, window_bounds = array<i64: 1, 1>}, {transform_indices = @transform_4, window_bounds = array<i64: 1, 128>}]} {
    %c0 = arith.constant 0 : index
    %c0_0 = arith.constant 0 : index
    %0 = vector.load %arg1[%c0, %c0_0] : memref<4x128xi32, #tpu.memory_space<vmem>>, vector<4x128xi32>
    %c0_1 = arith.constant 0 : index
    %c0_2 = arith.constant 0 : index
    %1 = vector.load %arg2[%c0_1, %c0_2] : memref<24x128xi32, #tpu.memory_space<vmem>>, vector<24x128xi32>
    %2 = vector.extract_strided_slice %0 {offsets = [0, 0], sizes = [1, 128], strides = [1, 1]} : vector<4x128xi32> to vector<1x128xi32>
    %3 = vector.extract_strided_slice %1 {offsets = [0, 0], sizes = [16, 128], strides = [1, 1]} : vector<24x128xi32> to vector<16x128xi32>
    %4 = vector.broadcast %2 : vector<1x128xi32> to vector<16x128xi32>
    %5 = arith.cmpi eq, %4, %3 : vector<16x128xi32>
    %6 = arith.extui %5 : vector<16x128xi1> to vector<16x128xi32>
    %7 = arith.sitofp %6 : vector<16x128xi32> to vector<16x128xf32>
    %c0_3 = arith.constant 0 : index
    %c0_4 = arith.constant 0 : index
    %8 = vector.load %arg6[%c0_3, %c0_4] : memref<56x128xf32, #tpu.memory_space<vmem>>, vector<16x128xf32>
    tpu.vector_store %arg6[%c0_3, %c0_4], %7 {strides = array<i32>} : memref<56x128xf32, #tpu.memory_space<vmem>>, vector<16x128xf32>,
    %9 = vector.extract_strided_slice %0 {offsets = [1, 0], sizes = [1, 128], strides = [1, 1]} : vector<4x128xi32> to vector<1x128xi32>
    %10 = vector.extract_strided_slice %1 {offsets = [0, 0], sizes = [8, 128], strides = [1, 1]} : vector<24x128xi32> to vector<8x128xi32>
    %11 = vector.broadcast %9 : vector<1x128xi32> to vector<8x128xi32>
    %12 = arith.cmpi eq, %11, %10 : vector<8x128xi32>
    %13 = arith.extui %12 : vector<8x128xi1> to vector<8x128xi32>
    %14 = arith.sitofp %13 : vector<8x128xi32> to vector<8x128xf32>
    %c16 = arith.constant 16 : index
    %c0_5 = arith.constant 0 : index
    %15 = vector.load %arg6[%c16, %c0_5] : memref<56x128xf32, #tpu.memory_space<vmem>>, vector<8x128xf32>
    tpu.vector_store %arg6[%c16, %c0_5], %14 {strides = array<i32>} : memref<56x128xf32, #tpu.memory_space<vmem>>, vector<8x128xf32>,
    %16 = vector.extract_strided_slice %0 {offsets = [2, 0], sizes = [1, 128], strides = [1, 1]} : vector<4x128xi32> to vector<1x128xi32>
    %17 = vector.extract_strided_slice %1 {offsets = [0, 0], sizes = [8, 128], strides = [1, 1]} : vector<24x128xi32> to vector<8x128xi32>
    %18 = vector.broadcast %16 : vector<1x128xi32> to vector<8x128xi32>
    %19 = arith.cmpi eq, %18, %17 : vector<8x128xi32>
    %20 = arith.extui %19 : vector<8x128xi1> to vector<8x128xi32>
    %21 = arith.sitofp %20 : vector<8x128xi32> to vector<8x128xf32>
    %c24 = arith.constant 24 : index
    %c0_6 = arith.constant 0 : index
    %22 = vector.load %arg6[%c24, %c0_6] : memref<56x128xf32, #tpu.memory_space<vmem>>, vector<8x128xf32>
    tpu.vector_store %arg6[%c24, %c0_6], %21 {strides = array<i32>} : memref<56x128xf32, #tpu.memory_space<vmem>>, vector<8x128xf32>,
    %23 = vector.extract_strided_slice %0 {offsets = [3, 0], sizes = [1, 128], strides = [1, 1]} : vector<4x128xi32> to vector<1x128xi32>
    %24 = vector.broadcast %23 : vector<1x128xi32> to vector<24x128xi32>
    %25 = arith.cmpi eq, %24, %1 : vector<24x128xi32>
    %26 = arith.extui %25 : vector<24x128xi1> to vector<24x128xi32>
    %27 = arith.sitofp %26 : vector<24x128xi32> to vector<24x128xf32>
    %c32 = arith.constant 32 : index
    %c0_7 = arith.constant 0 : index
    %28 = vector.load %arg6[%c32, %c0_7] : memref<56x128xf32, #tpu.memory_space<vmem>>, vector<24x128xf32>
    tpu.vector_store %arg6[%c32, %c0_7], %27 {strides = array<i32>} : memref<56x128xf32, #tpu.memory_space<vmem>>, vector<24x128xf32>,
    %c0_8 = arith.constant 0 : index
    %c0_9 = arith.constant 0 : index
    %29 = vector.load %arg3[%c0_8, %c0_9] : memref<1x56xf32, #tpu.memory_space<vmem>>, vector<1x56xf32>
    %c0_10 = arith.constant 0 : index
    %c0_11 = arith.constant 0 : index
    %30 = vector.load %arg6[%c0_10, %c0_11] : memref<56x128xf32, #tpu.memory_space<vmem>>, vector<56x128xf32>
    %cst = arith.constant dense<0.000000e+00> : vector<1x128xf32>
    %31 = tpu.matmul %29, %30, %cst {dimension_numbers = #tpu.dot_dimension_numbers<[1], [0], [0], [1], [0, 0, 1, 1], [], []>} : vector<1x56xf32>, vector<56x128xf32>, vector<1x128xf32> -> vector<1x128xf32>
    %c0_12 = arith.constant 0 : index
    %c0_13 = arith.constant 0 : index
    %32 = vector.load %arg4[%c0_12, %c0_13] : memref<1x1xf32, #tpu.memory_space<vmem>>, vector<1x1xf32>
    %33 = vector.broadcast %32 : vector<1x1xf32> to vector<1x128xf32>
    %34 = arith.addf %31, %33 : vector<1x128xf32>
    %cst_14 = arith.constant 0.000000e+00 : f32
    %35 = vector.broadcast %cst_14 : f32 to vector<1x128xf32>
    %36 = arith.subf %35, %34 : vector<1x128xf32>
    %37 = math.exp %36 : vector<1x128xf32>
    %cst_15 = arith.constant 1.000000e+00 : f32
    %38 = vector.broadcast %cst_15 : f32 to vector<1x128xf32>
    %39 = arith.addf %38, %37 : vector<1x128xf32>
    %40 = tpu.reciprocal %39 {approx = true} : vector<1x128xf32> -> vector<1x128xf32>
    %c0_16 = arith.constant 0 : index
    %c0_17 = arith.constant 0 : index
    %41 = vector.load %arg5[%c0_16, %c0_17] : memref<1x128xf32, #tpu.memory_space<vmem>>, vector<1x128xf32>
    tpu.vector_store %arg5[%c0_16, %c0_17], %40 {strides = array<i32>} : memref<1x128xf32, #tpu.memory_space<vmem>>, vector<1x128xf32>,
    return
  }
  func.func @transform_0(%arg0: i32) -> (i32, i32) {
    %c0_i32 = arith.constant 0 : i32
    %c0_i32_0 = arith.constant 0 : i32
    return %c0_i32, %arg0 : i32, i32
  }
  func.func @transform_1(%arg0: i32) -> (i32, i32) {
    %c0_i32 = arith.constant 0 : i32
    %c0_i32_0 = arith.constant 0 : i32
    %c0_i32_1 = arith.constant 0 : i32
    return %c0_i32, %c0_i32_0 : i32, i32
  }
  func.func @transform_2(%arg0: i32) -> (i32, i32) {
    %c0_i32 = arith.constant 0 : i32
    %c0_i32_0 = arith.constant 0 : i32
    %c0_i32_1 = arith.constant 0 : i32
    return %c0_i32, %c0_i32_0 : i32, i32
  }
  func.func @transform_3(%arg0: i32) -> (i32, i32) {
    %c0_i32 = arith.constant 0 : i32
    %c0_i32_0 = arith.constant 0 : i32
    %c0_i32_1 = arith.constant 0 : i32
    return %c0_i32, %c0_i32_0 : i32, i32
  }
  func.func @transform_4(%arg0: i32) -> (i32, i32) {
    %c0_i32 = arith.constant 0 : i32
    %c0_i32_0 = arith.constant 0 : i32
    return %c0_i32, %arg0 : i32, i32
  }
}

</mosaic_0001>

<bundles_post_ra>
// kernel: tpu_custom_call.1
= control target key start
LH: loop header
LB: loop body
LE: loop exit
PB: predicated region body
PF: predicated region fallthrough
CT: control target
= control target key end

     0   :  { %s430_s0 = inlined_call_operand.hbm [shape: s32[4,128], index: 0, kind: input, shape index: {}]   ;;  %s431_s1 = inlined_call_operand.hbm [shape: s32[24,128], index: 1, kind: input, shape index: {}]   ;;  %s432_s2 = inlined_call_operand.vmem [shape: f32[1,56], index: 2, kind: input, shape index: {}]   ;;  %s433_s3 = inlined_call_operand.<no memory space> [shape: f32[1,1], index: 3, kind: input, shape index: {}]   ;;  %s434_s4 = inlined_call_operand.hbm [shape: f32[1,128], index: 4, kind: output, shape index: {}]  }
   0x1   :  { %v9_v0 = vstv %s433_s3 }
   0x2   :  { %10 = vst [vmem:[#allocation3] sm:$0x1] %v9_v0 }
   0x3   :  { %11 = vsyncpa [#allocation5], 0 }
   0x4   :  { %12 = vsyncpa [#allocation8], 0 }
   0x5   :  { %13 = vsyncpa [#allocation6], 0  ;;  %s345_s17 = smov [#allocation4]   ;;  %s346_s19 = smov [#allocation7]  }
   0x6   :  { %s20_s18 = sshll.u32 %s345_s17, 4  ;;  %s29_s20 = sshll.u32 %s346_s19, 4  ;;  %s21_s18 = int_to_ptr.vmem [resolvable:$true] %s20_s18  ;;  %s384_s20 = int_to_ptr.vmem [resolvable:$true] %s29_s20 }
   0x7   :  { %s273_s23 = scalar_lea.hbm %s430_s0, 64 }
   0x8   :  { %p274_p0 = scmp.ne.s32.totalorder %s430_s0, %s273_s23  ;;  %p277_p1 = scmp.lt.u32.totalorder %s273_s23, %s430_s0 }
   0xa   :  { %p279_p2 = pnand %p277_p1, %p274_p0 }
   0xc   :  { %282 = shalt.err (!%p279_p2)
}
   0xd   :  { %s283_s27 = scalar_lea.vmem %s21_s18, 64  ;;  %p288_p4 = scmp.lt.s32.totalorder %s21_s18, %s21_s18 }
   0xe   :  { %p284_p3 = scmp.ne.s32.totalorder %s21_s18, %s283_s27  ;;  %p289_p5 = scmp.lt.s32.totalorder %s283_s27, %s283_s27 }
  0x10   :  { %p290_p6 = por %p289_p5, %p288_p4 }
  0x12   :  { %p291_p7 = pnand %p290_p6, %p284_p3 }
  0x14   :  { %294 = shalt.err (!%p291_p7)
}
  0x15   :  { %23 = dma.hbm_to_vmem [thread:$0]  %s430_s0, 64, %s21_s18, [#allocation5]  }
  0x16   :  { %s295_s6 = scalar_lea.hbm %s431_s1, 384 }
  0x17   :  { %p296_p8 = scmp.ne.s32.totalorder %s431_s1, %s295_s6  ;;  %p299_p9 = scmp.lt.u32.totalorder %s295_s6, %s431_s1 }
  0x19   :  { %p301_p10 = pnand %p299_p9, %p296_p8 }
  0x1b   :  { %304 = shalt.err (!%p301_p10)
}
  0x1c   :  { %s305_s11 = scalar_lea.vmem %s384_s20, 384  ;;  %p310_p12 = scmp.lt.s32.totalorder %s384_s20, %s384_s20 }
  0x1d   :  { %p306_p11 = scmp.ne.s32.totalorder %s384_s20, %s305_s11  ;;  %p311_p13 = scmp.lt.s32.totalorder %s305_s11, %s305_s11 }
  0x1f   :  { %p312_p0 = por %p311_p13, %p310_p12 }
  0x21   :  { %p313_p1 = pnand %p312_p0, %p306_p11 }
  0x23   :  { %316 = shalt.err (!%p313_p1)
}
  0x24   :  { %s347_s0 = smov 128   ;;  %s348_s12 = smov 8  }
  0x25   :  { %35 = dma.hbm_to_vmem [thread:$0]  %s431_s1, 384, %s384_s20, [#allocation8], %s347_s0, %s347_s0, %s348_s12  }
  0x26   :  { %339 = dma.done.wait [#allocation5], 64  }
  0x27   :  { %340 = vsyncadd [#allocation5], 4294967232 }
  0x28   :  { %341 = dma.done.wait [#allocation8], 384  }
  0x29   :  { %342 = vsyncadd [#allocation8], 4294966912  ;;  %v50_v1 = vlaneseq  ;;  %v349_v2 = vmov 0.0|0.0   ;;  %vm350_vm0 = vmmov 0   ;;  %v351_v4 = vmov 0.0   ;;  %v47_v11 = vld [vmem:[#allocation7] sm:$0xff] }
  0x2a   :  { %248 = vmatprep.subr.bf16.mxu0 %v349_v2  ;;  %245 = vmatprep.mubr.msk.f32.mxu0 %vm350_vm0, %v351_v4  ;;  %v352_v5 = vmov 0   ;;  %v46_v10 = vld [vmem:[#allocation4] sm:$0xf]  ;;  %v48_v12 = vld [vmem:[#allocation7 + $0x8] sm:$0xff]  ;;  %v102_v16 = vld [vmem:[#allocation3] sm:$0x1] }
  0x2b   :  { %v51_v3 = vshrl.u32 %v50_v1, 7  ;;  %268 = vset.pattern.permute.xlu0 %v352_v5  ;;  %v353_v18 = vmov 1.0|1.0   ;;  %v49_v19 = vld [vmem:[#allocation7 + $0x10] sm:$0xff]  ;;  %v94_v20 = vld [vmem:[%s432_s2] sm:$0x1] }
  0x2c   :  { %105 = vperm.xlu0 %268, %v102_v16   ;;  %vm112_vm11 = vcmask 457728   ;;  %v354_v21 = vmov 1.0   ;;  %s355_s16 = smov [#allocation9]  }
  0x2d   :  { %v52_v6 = vsub.s32 0, %v51_v3  ;;  %v64_v7 = vsub.s32 1, %v51_v3  ;;  %v72_v8 = vsub.s32 2, %v51_v3  ;;  %v80_v9 = vsub.s32 3, %v51_v3  ;;  %s198_s17 = sshll.u32 %s355_s16, 4  ;;  %s199_s17 = int_to_ptr.vmem [resolvable:$true] %s198_s17 }
  0x2e   :  { %s317_s2 = scalar_lea.vmem %s199_s17, 16  ;;  %s321_s18 = scalar_lea.vmem %s199_s17, 32 }
  0x2f   :  { %v53_v13 = vrot.slane %v46_v10, %v52_v6  ;;  %v65_v14 = vrot.slane %v46_v10, %v64_v7  ;;  %v73_v15 = vrot.slane %v46_v10, %v72_v8  ;;  %v81_v17 = vrot.slane %v46_v10, %v80_v9  ;;  %p318_p2 = scmp.ne.s32.totalorder %s199_s17, %s317_s2  ;;  %p322_p3 = scmp.lt.s32.totalorder %s199_s17, %s199_s17 }
  0x30   :  { %p323_p4 = scmp.lt.s32.totalorder %s321_s18, %s317_s2 }
  0x31   :  { %vm54_vm1 = vcmp.eq.s32.totalorder %v53_v13, %v47_v11  ;;  %vm55_vm2 = vcmp.eq.s32.totalorder %v53_v13, %v48_v12  ;;  %vm66_vm3 = vcmp.eq.s32.totalorder %v65_v14, %v47_v11  ;;  %vm74_vm4 = vcmp.eq.s32.totalorder %v73_v15, %v47_v11 }
  0x32   :  { %vm249_vm5 = vmpackc.low %vm55_vm2, %vm54_vm1  ;;  %vm82_vm7 = vcmp.eq.s32.totalorder %v81_v17, %v47_v11  ;;  %vm83_vm8 = vcmp.eq.s32.totalorder %v81_v17, %v48_v12  ;;  %vm84_vm10 = vcmp.eq.s32.totalorder %v81_v17, %v49_v19  ;;  %p324_p5 = por %p323_p4, %p322_p3 }
  0x33   :  { %250 = vmatpush3.bf16.msk.msra.mxu0 %vm249_vm5, %v353_v18  ;;  %vm252_vm6 = vmpackc.low %vm74_vm4, %vm66_vm3 }
  0x34   :  { %251 = vmatprep.subr.bf16.mxu0 %v349_v2  ;;  %vm255_vm9 = vmpackc.low %vm83_vm8, %vm82_vm7  ;;  %p325_p6 = pnand %p324_p5, %p318_p2 }
  0x37   :  { %253 = vmatpush3.bf16.msk.msra.mxu0 %vm252_vm6, %v353_v18 }
  0x38   :  { %254 = vmatprep.subr.bf16.mxu0 %v349_v2 }
  0x3b   :  { %256 = vmatpush3.bf16.msk.msra.mxu0 %vm255_vm9, %v353_v18 }
  0x3c   :  { %243 = vmatprep.subr.mxu0 %v351_v4 }
  0x3f   :  { %244 = vmatpush3.msk.msra.mxu0 %vm84_vm10, %v354_v21 }
  0x40   :  { %246 = vmatmul.mubr.msk.f32.vlgmr.msra.gmra.mrb[0].mxu0 %vm112_vm11, %v94_v20 }
  0xab   :  { %v106_v22 = vpop.permute.xlu0 %105 }
  0xac   :  { %v111_v23 = vrot.slane %v106_v22, %v52_v6 }
 0x113   :  { %v182_v24 = vpop.f32.mrb[0].mxu0 }
 0x114   :  { %v183_v25 = vadd.f32 %v182_v24, %v111_v23  ;;  %v247_v26 = vpop.f32.mrb[1].mxu0 }
 0x116   :  { %v186_v27 = vsub.f32 0.0, %v183_v25 }
 0x118   :  { %v187_v28 = vmul.f32 1.442695, %v186_v27 }
 0x11a   :  { %269 = vpow2.f32 %v187_v28 }
 0x124   :  { %v270_v29 = vpop.eup %269 }
 0x125   :  { %v189_v30 = vadd.f32 1.0, %v270_v29 }
 0x127   :  { %271 = vrcp.f32 %v189_v30 }
 0x131   :  { %v272_v31 = vpop.eup %271 }
 0x132   :  { %191 = vst [vmem:[#allocation9] sm:$0x1] %v272_v31 }
 0x133   :  { %328 = shalt.err (!%p325_p6)
}
 0x134   :  { %s329_s21 = scalar_lea.hbm %s434_s4, 16 }
 0x135   :  { %p330_p7 = scmp.ne.s32.totalorder %s434_s4, %s329_s21  ;;  %p333_p8 = scmp.lt.u32.totalorder %s329_s21, %s434_s4 }
 0x137   :  { %p335_p9 = pnand %p333_p8, %p330_p7 }
 0x139   :  { %338 = shalt.err (!%p335_p9)
}
 0x13a   :  { %201 = dma.vmem_to_hbm [thread:$0]  %s199_s17, 16, %s434_s4, [#allocation6]  }
 0x13b   :  { %343 = dma.done.wait [#allocation6], 16  }
 0x13c   :  { %344 = vsyncadd [#allocation6], 4294967280 }
 0x13d   :  { %205 = vsyncpa [#allocation5], 1 }
 0x13e   :  { %206 = vsyncpa [#allocation8], 1 }
 0x13f   :  { %207 = vsyncpa [#allocation6], 1 }

</bundles_post_ra>
